<compile_context>
chip_gen: v5e
topology: v5e:2x2
jax: 0.10.0
libtpu: 0.0.40
codegen_flags: <defaults>
</compile_context>

<pallas_src>
import functools

import jax
import jax.numpy as jnp
from jax.experimental import pallas as pl
from jax.experimental.pallas import tpu as pltpu


def _model_kernel(w_ref, b_ref, x_ref, o_ref, *, out_f, in_f, d1):
    """out[b, o*d1 + j] = sum_k w[o*in_f + k] * x[b, k*d1 + j] + b[o]

    w_ref: (out_f*in_f,) f32 in SMEM   (scalar reads)
    b_ref: (out_f,)      f32 in SMEM   (scalar reads)
    x_ref: (TILE_B, in_f*d1)  f32 VMEM batch tile
    o_ref: (TILE_B, out_f*d1) f32 VMEM batch tile
    """
    x = x_ref[...]
    cols = []
    # out_f / in_f / d1 are tiny compile-time constants -> fully unrolled FMAs.
    for o in range(out_f):
        acc = b_ref[o] + w_ref[o * in_f] * x[:, :d1]          # bias folded into init
        for k in range(1, in_f):
            acc = acc + w_ref[o * in_f + k] * x[:, k * d1:(k + 1) * d1]
        cols.append(acc)
    o_ref[...] = jnp.concatenate(cols, axis=-1).astype(o_ref.dtype)


def model_forward(x, w1, b1, *, max_tile_b=512):
    """Returns v3 = permute(linear1(permute(x, (0,2,1))), (0,2,1)).

    x: (B, D0, D1) f32; w1: (out_f, D0); b1: (out_f,). Output: (B, out_f, D1).
    """
    B, D0, D1 = x.shape
    out_f, in_f = w1.shape
    assert D0 == in_f

    # Free views only — no transposes, no copies.
    x2d = x.reshape(B, in_f * D1)        # contiguous view
    w_flat = w1.reshape(out_f * in_f)    # tiny -> SMEM scalars
    b_flat = b1.reshape(out_f)

    # Batch tiling: whole batch if small, otherwise 512-row (8-aligned) tiles.
    tile_b = B if B <= max_tile_b else max_tile_b
    grid = (pl.cdiv(B, tile_b),)

    kernel = functools.partial(_model_kernel, out_f=out_f, in_f=in_f, d1=D1)

    out2d = pl.pallas_call(
        kernel,
        grid=grid,
        out_shape=jax.ShapeDtypeStruct((B, out_f * D1), jnp.float32),
        in_specs=[
            pl.BlockSpec(memory_space=pltpu.MemorySpace.SMEM),      # w1 scalars
            pl.BlockSpec(memory_space=pltpu.MemorySpace.SMEM),      # b1 scalars
            pl.BlockSpec((tile_b, in_f * D1), lambda i: (i, 0)),    # x batch tile
        ],
        out_specs=pl.BlockSpec((tile_b, out_f * D1), lambda i: (i, 0)),
        compiler_params=pltpu.CompilerParams(
            dimension_semantics=("parallel",),
        ),
    )(w_flat, b_flat, x2d)

    return out2d.reshape(B, out_f, D1)   # free view
    # TODO(synk): v4 = linear2(v3) is dead code in the reference forward (never returned); not computed.


if __name__ == "__main__":
    key = jax.random.PRNGKey(0)
    kx, kw1, kb1, kw2, kb2 = jax.random.split(key, 5)

    # Shapes from the spec: x1 = torch.randn(1, 2, 2); Linear(2,3) / Linear(3,2).
    x = jax.random.normal(kx, (1, 2, 2), dtype=jnp.float32)
    w1 = jax.random.normal(kw1, (3, 2), dtype=jnp.float32) * 0.5
    b1 = jax.random.normal(kb1, (3,), dtype=jnp.float32) * 0.5
    # linear2 params exist in the module but its output is never returned.
    w2 = jax.random.normal(kw2, (2, 3), dtype=jnp.float32) * 0.5
    b2 = jax.random.normal(kb2, (2,), dtype=jnp.float32) * 0.5

    out = jax.block_until_ready(model_forward(x, w1, b1))

    # Pure-JAX reference of the PyTorch forward (returns v3).
    v1 = jnp.transpose(x, (0, 2, 1))
    v2 = jnp.einsum("bji,oi->bjo", v1, w1) + b1
    v3_ref = jnp.transpose(v2, (0, 2, 1))
    assert out.shape == (1, 3, 2)
    assert jnp.allclose(out, v3_ref, atol=1e-5, rtol=1e-5)

    # Batched sanity check (exercises the gridded path; B not hardcoded).
    xb = jax.random.normal(kx, (16, 2, 2), dtype=jnp.float32)
    outb = jax.block_until_ready(model_forward(xb, w1, b1))
    refb = jnp.transpose(
        jnp.einsum("bji,oi->bjo", jnp.transpose(xb, (0, 2, 1)), w1) + b1, (0, 2, 1))
    assert outb.shape == (16, 3, 2)
    assert jnp.allclose(outb, refb, atol=1e-5, rtol=1e-5)

    print("KERNEL_OK")
</pallas_src>

<mosaic_0001>
module attributes {stable_mosaic.version = 11 : i64} {
  func.func @_model_kernel(%arg0: i32, %arg1: memref<6xf32, #tpu.memory_space<smem>>, %arg2: memref<3xf32, #tpu.memory_space<smem>>, %arg3: memref<1x4xf32, #tpu.memory_space<vmem>>, %arg4: memref<1x6xf32, #tpu.memory_space<vmem>>) attributes {dimension_semantics = [#tpu.dimension_semantics<parallel>], iteration_bounds = array<i64: 1>, scalar_prefetch = 0 : i64, scratch_operands = 0 : i64, tpu.core_type = #tpu.core_type<tc>, window_params = [{transform_indices = @transform_0, window_bounds = array<i64: 6>}, {transform_indices = @transform_1, window_bounds = array<i64: 3>}, {transform_indices = @transform_2, window_bounds = array<i64: 1, 4>}, {transform_indices = @transform_3, window_bounds = array<i64: 1, 6>}]} {
    %c0 = arith.constant 0 : index
    %c0_0 = arith.constant 0 : index
    %0 = vector.load %arg3[%c0, %c0_0] : memref<1x4xf32, #tpu.memory_space<vmem>>, vector<1x4xf32>
    %c0_1 = arith.constant 0 : index
    %1 = memref.load %arg2[%c0_1] : memref<3xf32, #tpu.memory_space<smem>>
    %c0_2 = arith.constant 0 : index
    %2 = memref.load %arg1[%c0_2] : memref<6xf32, #tpu.memory_space<smem>>
    %3 = vector.extract_strided_slice %0 {offsets = [0, 0], sizes = [1, 2], strides = [1, 1]} : vector<1x4xf32> to vector<1x2xf32>
    %4 = vector.broadcast %2 : f32 to vector<1x2xf32>
    %5 = arith.mulf %4, %3 : vector<1x2xf32>
    %6 = vector.broadcast %1 : f32 to vector<1x2xf32>
    %7 = arith.addf %6, %5 : vector<1x2xf32>
    %c1 = arith.constant 1 : index
    %8 = memref.load %arg1[%c1] : memref<6xf32, #tpu.memory_space<smem>>
    %9 = vector.extract_strided_slice %0 {offsets = [0, 2], sizes = [1, 2], strides = [1, 1]} : vector<1x4xf32> to vector<1x2xf32>
    %10 = vector.broadcast %8 : f32 to vector<1x2xf32>
    %11 = arith.mulf %10, %9 : vector<1x2xf32>
    %12 = arith.addf %7, %11 : vector<1x2xf32>
    %c1_3 = arith.constant 1 : index
    %13 = memref.load %arg2[%c1_3] : memref<3xf32, #tpu.memory_space<smem>>
    %c2 = arith.constant 2 : index
    %14 = memref.load %arg1[%c2] : memref<6xf32, #tpu.memory_space<smem>>
    %15 = vector.extract_strided_slice %0 {offsets = [0, 0], sizes = [1, 2], strides = [1, 1]} : vector<1x4xf32> to vector<1x2xf32>
    %16 = vector.broadcast %14 : f32 to vector<1x2xf32>
    %17 = arith.mulf %16, %15 : vector<1x2xf32>
    %18 = vector.broadcast %13 : f32 to vector<1x2xf32>
    %19 = arith.addf %18, %17 : vector<1x2xf32>
    %c3 = arith.constant 3 : index
    %20 = memref.load %arg1[%c3] : memref<6xf32, #tpu.memory_space<smem>>
    %21 = vector.extract_strided_slice %0 {offsets = [0, 2], sizes = [1, 2], strides = [1, 1]} : vector<1x4xf32> to vector<1x2xf32>
    %22 = vector.broadcast %20 : f32 to vector<1x2xf32>
    %23 = arith.mulf %22, %21 : vector<1x2xf32>
    %24 = arith.addf %19, %23 : vector<1x2xf32>
    %c2_4 = arith.constant 2 : index
    %25 = memref.load %arg2[%c2_4] : memref<3xf32, #tpu.memory_space<smem>>
    %c4 = arith.constant 4 : index
    %26 = memref.load %arg1[%c4] : memref<6xf32, #tpu.memory_space<smem>>
    %27 = vector.extract_strided_slice %0 {offsets = [0, 0], sizes = [1, 2], strides = [1, 1]} : vector<1x4xf32> to vector<1x2xf32>
    %28 = vector.broadcast %26 : f32 to vector<1x2xf32>
    %29 = arith.mulf %28, %27 : vector<1x2xf32>
    %30 = vector.broadcast %25 : f32 to vector<1x2xf32>
    %31 = arith.addf %30, %29 : vector<1x2xf32>
    %c5 = arith.constant 5 : index
    %32 = memref.load %arg1[%c5] : memref<6xf32, #tpu.memory_space<smem>>
    %33 = vector.extract_strided_slice %0 {offsets = [0, 2], sizes = [1, 2], strides = [1, 1]} : vector<1x4xf32> to vector<1x2xf32>
    %34 = vector.broadcast %32 : f32 to vector<1x2xf32>
    %35 = arith.mulf %34, %33 : vector<1x2xf32>
    %36 = arith.addf %31, %35 : vector<1x2xf32>
    %37 = tpu.concatenate %12, %24, %36 in 1 : vector<1x2xf32>, vector<1x2xf32>, vector<1x2xf32> -> vector<1x6xf32>
    %c0_5 = arith.constant 0 : index
    %c0_6 = arith.constant 0 : index
    %38 = vector.load %arg4[%c0_5, %c0_6] : memref<1x6xf32, #tpu.memory_space<vmem>>, vector<1x6xf32>
    tpu.vector_store %arg4[%c0_5, %c0_6], %37 {strides = array<i32>} : memref<1x6xf32, #tpu.memory_space<vmem>>, vector<1x6xf32>,
    return
  }
  func.func @transform_0(%arg0: i32) -> i32 {
    %c0_i32 = arith.constant 0 : i32
    %c0_i32_0 = arith.constant 0 : i32
    return %c0_i32 : i32
  }
  func.func @transform_1(%arg0: i32) -> i32 {
    %c0_i32 = arith.constant 0 : i32
    %c0_i32_0 = arith.constant 0 : i32
    return %c0_i32 : i32
  }
  func.func @transform_2(%arg0: i32) -> (i32, i32) {
    %c0_i32 = arith.constant 0 : i32
    %c0_i32_0 = arith.constant 0 : i32
    return %arg0, %c0_i32 : i32, i32
  }
  func.func @transform_3(%arg0: i32) -> (i32, i32) {
    %c0_i32 = arith.constant 0 : i32
    %c0_i32_0 = arith.constant 0 : i32
    return %arg0, %c0_i32 : i32, i32
  }
}

</mosaic_0001>

<bundles_post_ra>
// kernel: tpu_custom_call.1
= control target key start
LH: loop header
LB: loop body
LE: loop exit
PB: predicated region body
PF: predicated region fallthrough
CT: control target
= control target key end

     0   :  { %8 = vsyncpa [#allocation4], 0  ;;  %s222_s0 = inlined_call_operand.hbm [shape: f32[6], index: 0, kind: input, shape index: {}]   ;;  %s223_s1 = inlined_call_operand.hbm [shape: f32[3], index: 1, kind: input, shape index: {}]   ;;  %s224_s2 = inlined_call_operand.vmem [shape: f32[1,4], index: 2, kind: input, shape index: {}]   ;;  %s225_s3 = inlined_call_operand.hbm [shape: f32[1,6], index: 3, kind: output, shape index: {}]  }
   0x1   :  { %9 = vsyncpa [#allocation6], 0 }
   0x2   :  { %10 = vsyncpa [#allocation3], 0  ;;  %s16_s14 = sshll.u32 %s222_s0, 4  ;;  %s25_s17 = sshll.u32 %s223_s1, 4  ;;  %s17_s14 = int_to_ptr.hbm [resolvable:$true] %s16_s14  ;;  %s26_s17 = int_to_ptr.hbm [resolvable:$true] %s25_s17 }
   0x3   :  { %s184_s18 = smov [#allocation2]   ;;  %s185_s19 = smov [#allocation5]  }
   0x4   :  { %19 = dma.hbm_to_smem %s17_s14, 16, %s184_s18, [#allocation4]  }
   0x5   :  { %28 = dma.hbm_to_smem %s26_s17, 16, %s185_s19, [#allocation6]  }
   0x6   :  { %178 = dma.done.wait [#allocation4], 16  }
   0x7   :  { %179 = vsyncadd [#allocation4], 4294967280 }
   0x8   :  { %180 = dma.done.wait [#allocation6], 16  }
   0x9   :  { %181 = vsyncadd [#allocation6], 4294967280 }
   0xa   :  { %39 = sfence }
   0xb   :  { %s120_s20 = sld [smem:[#allocation2 + $0x3]]  ;;  %v40_v0 = vld [vmem:[%s224_s2] sm:$0x1]  ;;  %s186_s1 = smov 126   ;;  %vm93_vm0 = vcmask 15360   ;;  %vm95_vm1 = vcmask 31744  }
   0xc   :  { %s123_s21 = sld [smem:[#allocation2 + $0x5]]  ;;  %s187_s2 = smov 2   ;;  %vm97_vm2 = vcmask 40960  }
   0xd   :  { %s117_s22 = sld [smem:[#allocation2 + $0x1]]  ;;  %s188_s28 = smov 4  }
   0xe   :  { %s119_s24 = sld [smem:[#allocation2 + $0x2]]  ;;  %s189_s4 = smov [#allocation7]  }
   0xf   :  { %s118_s25 = sld [smem:[#allocation5 + $0x1]]  ;;  %s104_s5 = sshll.u32 %s189_s4, 4  ;;  %s105_s5 = int_to_ptr.vmem [resolvable:$true] %s104_s5 }
  0x10   :  { %s122_s26 = sld [smem:[#allocation2 + $0x4]]  ;;  %s106_s8 = sshll.u32 %s225_s3, 4  ;;  %s107_s8 = int_to_ptr.hbm [resolvable:$true] %s106_s8 }
  0x11   :  { %v62_v1 = vstv %s120_s20  ;;  %s121_s27 = sld [smem:[#allocation5 + $0x2]] }
  0x12   :  { %v63_v2 = vmul.f32 %v62_v1, %v40_v0  ;;  %v76_v5 = vstv %s123_s21  ;;  %s42_s29 = sld [smem:[#allocation2]] }
  0x13   :  { %v48_v3 = vstv %s117_s22  ;;  %v77_v6 = vmul.f32 %v76_v5, %v40_v0  ;;  %s41_s30 = sld [smem:[#allocation5]] }
  0x14   :  { %65 = vrot.lane.b32.xlu0 %v63_v2, %s186_s1  ;;  %v49_v4 = vmul.f32 %v48_v3, %v40_v0  ;;  %v57_v7 = vstv %s119_s24 }
  0x15   :  { %v58_v8 = vmul.f32 %v57_v7, %v40_v0  ;;  %v59_v9 = vstv %s118_s25 }
  0x16   :  { %51 = vrot.lane.b32.xlu1 %v49_v4, %s186_s1  ;;  %v71_v11 = vstv %s122_s26 }
  0x17   :  { %v60_v10 = vadd.f32 %v59_v9, %v58_v8  ;;  %v72_v14 = vmul.f32 %v71_v11, %v40_v0  ;;  %v73_v15 = vstv %s121_s27 }
  0x18   :  { %v43_v21 = vstv %s42_s29 }
  0x19   :  { %v74_v17 = vadd.f32 %v73_v15, %v72_v14  ;;  %v44_v23 = vmul.f32 %v43_v21, %v40_v0  ;;  %v45_v24 = vstv %s41_s30 }
  0x1b   :  { %v46_v25 = vadd.f32 %v45_v24, %v44_v23 }
  0x1c   :  { %79 = vrot.lane.b32.xlu0 %v77_v6, %s186_s1 }
  0x86   :  { %v66_v12 = vpop.permute.xlu0 %65 }
  0x87   :  { %v68_v13 = vadd.f32 %v66_v12, %v60_v10 }
  0x88   :  { %v52_v22 = vpop.permute.xlu1 %51 }
  0x89   :  { %v84_v16 = vperm.slane %v68_v13, 0  ;;  %v54_v26 = vadd.f32 %v52_v22, %v46_v25 }
  0x8b   :  { %85 = vrot.lane.b32.xlu1 %v84_v16, %s187_s2 }
  0x8e   :  { %v80_v18 = vpop.permute.xlu0 %79 }
  0x8f   :  { %v82_v19 = vadd.f32 %v80_v18, %v74_v17 }
  0x91   :  { %v89_v20 = vperm.slane %v82_v19, 0 }
  0x93   :  { %90 = vrot.lane.b32.xlu2 %v89_v20, %s188_s28 }
  0xed   :  { %v91_v27 = vpop.permute.xlu2 %90 }
  0xfd   :  { %v86_v28 = vpop.permute.xlu1 %85 }
  0xfe   :  { %v94_v29 = vsel %vm93_vm0, %v54_v26, %v86_v28 }
  0xff   :  { %v96_v30 = vsel %vm95_vm1, %v94_v29, %v91_v27 }
 0x100   :  { %98 = vst.msk [vmem:[#allocation7] sm:$0x1] %vm97_vm2, %v96_v30 }
 0x101   :  { %109 = dma.vmem_to_hbm [thread:$0]  %s105_s5, 16, %s107_s8, [#allocation3]  }
 0x102   :  { %182 = dma.done.wait [#allocation3], 16  }
 0x103   :  { %183 = vsyncadd [#allocation3], 4294967280 }
 0x104   :  { %114 = vsyncpa [#allocation3], 1 }
 0x105   :  { %115 = vsyncpa [#allocation4], 1 }
 0x106   :  { %116 = vsyncpa [#allocation6], 1 }

</bundles_post_ra>
